<compile_context>
chip_gen: v7x
topology: tpu7x:2x2x1
jax: 0.10.0
libtpu: 0.0.40
codegen_flags: <defaults>
</compile_context>

<pallas_src>
import functools

import jax
import jax.numpy as jnp
from jax.experimental import pallas as pl
from jax.experimental.pallas import tpu as pltpu


def _round_up(x: int, m: int) -> int:
    return (x + m - 1) // m * m


def _vmem_capacity_bytes() -> int:
    """Per-core VMEM capacity; falls back to the smallest supported value."""
    try:
        return int(pltpu.get_tpu_info().vmem_capacity_bytes)
    except Exception:
        return 64 << 20          # v7x per-TensorCore VMEM -- safe everywhere


# ---------------------------------------------------------------------------
# Plain-JAX glue: dense GCN-normalized adjacency with self-loops.
# (Data-dependent scatter from edge_index -- setup work, not the hot loop.)
# ---------------------------------------------------------------------------
def _gcn_adjacency(edge_index, num_nodes):
    src = edge_index[0]
    dst = edge_index[1]
    loop = jnp.arange(num_nodes, dtype=edge_index.dtype)
    src = jnp.concatenate([src, loop])
    dst = jnp.concatenate([dst, loop])
    ew = jnp.ones(src.shape[0], dtype=jnp.float32)
    # PyG gcn_norm: degree of the aggregation (dst) index after self-loops.
    deg = jnp.zeros((num_nodes,), jnp.float32).at[dst].add(ew)
    dinv = jnp.where(deg > 0, jax.lax.rsqrt(deg), 0.0)
    norm = dinv[dst] * ew * dinv[src]
    # A_hat[i, j]: contribution of node j to node i.
    return jnp.zeros((num_nodes, num_nodes), jnp.float32).at[dst, src].add(norm)


# ---------------------------------------------------------------------------
# Pallas kernel
# ---------------------------------------------------------------------------
def _lgcn_kernel(a_ref, x_ref, w_ref, b_ref, o_ref, cur0, cur1, *rest,
                 K: int, TM: int, a_resident: bool):
    """Grid = (K+1, num_row_tiles).  Step (h, i) handles rows [i*TM,(i+1)*TM)
    of the hop-h term (A_hat^h x) @ W_h.

    a_ref : resident -> (num_tiles, TM, N_pad) raw HBM ref (pl.ANY)
            streamed -> (1, TM, N_pad) pipelined row slab            bf16
    x_ref : (TM, F_pad) streamed, consumed only at h==0              bf16
    w_ref : (1, F_pad, O_pad) streamed per hop                       bf16
    b_ref : (1, O_pad)                                               f32
    o_ref : (N_pad, O_pad) full-array resident f32 accumulator
    cur0/cur1 : (N_pad, F_pad) VMEM scratch, hop ping-pong           bf16
    rest  : resident path only -> (a_vmem scratch, DMA semaphore)
    """
    if a_resident:
        a_vmem, a_sem = rest

    h = pl.program_id(0)                  # hop index (0 .. K)
    i = pl.program_id(1)                  # row tile index
    r0 = pl.multiple_of(i * TM, TM)
    rows = pl.ds(r0, TM)

    if a_resident:
        # One-shot HBM -> VMEM copy of A_hat, single-buffered.  Started on the
        # first grid step, consumed from hop 1 onward; the wait lands on the
        # first step that actually needs it (overlaps the x@W0 pass).
        @pl.when(jnp.logical_and(h == 0, i == 0))
        def _():
            pltpu.make_async_copy(a_ref, a_vmem, a_sem).start()

        @pl.when(jnp.logical_and(h == 1, i == 0))
        def _():
            pltpu.make_async_copy(a_ref, a_vmem, a_sem).wait()

    @pl.when(h == 0)
    def _():
        # Hop 0: stage x into the ping-pong buffer and initialise the resident
        # output accumulator with x @ W_0 + bias (bias added exactly once).
        x_tile = x_ref[...]
        cur0[rows, :] = x_tile
        o_ref[rows, :] = (
            jnp.dot(x_tile, w_ref[0], preferred_element_type=jnp.float32)
            + b_ref[...])

    def _prop(src_ref, dst_ref):
        # Propagation hop: rows of A_hat^(h) x from the full hop h-1 features.
        a_tile = a_vmem[i] if a_resident else a_ref[0]          # (TM, N_pad)
        new = jnp.dot(a_tile, src_ref[...], preferred_element_type=jnp.float32)
        new_q = new.astype(dst_ref.dtype)

        # A_hat^K x is never consumed again -> skip the store on the last hop.
        @pl.when(h < K)
        def _():
            dst_ref[rows, :] = new_q

        o_ref[rows, :] = o_ref[rows, :] + jnp.dot(
            new_q, w_ref[0], preferred_element_type=jnp.float32)

    @pl.when(jnp.logical_and(h > 0, h % 2 == 1))
    def _():
        _prop(cur0, cur1)        # odd hops read cur0, write cur1

    @pl.when(jnp.logical_and(h > 0, h % 2 == 0))
    def _():
        _prop(cur1, cur0)        # even hops (>=2) read cur1, write cur0


# ---------------------------------------------------------------------------
# Wrapper
# ---------------------------------------------------------------------------
def lgcn_forward(feature, edge_index, weight, bias, *, K: int = 8,
                 a_dtype=jnp.bfloat16, a_resident=None):
    """feature: [N, F] f32, edge_index: [2, E] int32,
       weight: [O, F*(K+1)] (PyTorch nn.Linear layout), bias: [O].
       Returns [N, O] f32 == Linear(CombUnweighted(K)(feature, edge_index))."""
    N, F = feature.shape
    O = weight.shape[0]
    assert K >= 1
    assert weight.shape[1] == F * (K + 1)

    a_hat = _gcn_adjacency(edge_index, N)
    vmem_cap = _vmem_capacity_bytes()

    # Lane-dense padding: F/O rounded to 128 (MXU contraction + unmasked
    # stores).  TODO(synk): pad to 256 on v6e/v7x when the real F/O exceed 128.
    F_pad = _round_up(max(F, 128), 128)
    O_pad = _round_up(max(O, 128), 128)

    # Row tile: one tile for small graphs; bigger tiles on 128-MiB parts
    # (v5e/v6e) halve the grid-step count; 256 keeps the streamed slab modest
    # where VMEM is tight (v7x).
    if N <= 256:
        TM = _round_up(max(N, 128), 128)
    elif N >= 1024 and vmem_cap >= (100 << 20):
        TM = 512
    else:
        TM = 256
    N_pad = _round_up(N, TM)
    num_tiles = N_pad // TM

    itm = jnp.dtype(a_dtype).itemsize

    # ---- VMEM accounting (auto-pipelined blocks counted x2, manual scratch
    #      x1).  Residency budget: ~75% of the physical per-core capacity,
    #      with headroom for compiler/internal scratch (matters on v7x). ----
    fixed = (2 * N_pad * F_pad * itm            # cur0 + cur1 ping-pong scratch
             + 2 * TM * F_pad * itm             # streamed x tile (double buf)
             + 2 * F_pad * O_pad * itm          # streamed W[h]   (double buf)
             + 2 * O_pad * 4                    # bias
             + 2 * N_pad * O_pad * 4)           # resident f32 output/acc
    budget = min(int(vmem_cap * 0.75), vmem_cap - (12 << 20))
    a_res_bytes = N_pad * N_pad * itm           # single-buffered scratch copy
    if a_resident is None:
        a_resident = fixed + a_res_bytes <= budget
    a_vmem_bytes = a_res_bytes if a_resident else 2 * TM * N_pad * itm
    needed = fixed + a_vmem_bytes
    vmem_limit = int(min(max(needed + (8 << 20), 32 << 20),
                         max(vmem_cap - (4 << 20), 32 << 20)))

    # ---- operands: bf16, zero-padded.  A pre-tiled to (num_tiles, TM, N_pad)
    #      so row slabs are leading-axis indexed, never materialized slices.
    a_pad = (jnp.zeros((N_pad, N_pad), a_dtype)
             .at[:N, :N].set(a_hat.astype(a_dtype))
             .reshape(num_tiles, TM, N_pad))
    x_pad = jnp.zeros((N_pad, F_pad), a_dtype).at[:N, :F].set(
        feature.astype(a_dtype))
    w_stack = weight.T.reshape(K + 1, F, O)            # hop-major blocks of W.T
    w_pad = jnp.zeros((K + 1, F_pad, O_pad), a_dtype).at[:, :F, :O].set(
        w_stack.astype(a_dtype))
    b_pad = jnp.zeros((1, O_pad), jnp.float32).at[0, :O].set(
        bias.astype(jnp.float32))

    if a_resident:
        # Raw HBM ref; copied once into single-buffered VMEM scratch in-kernel.
        a_spec = pl.BlockSpec(memory_space=pl.ANY)
    else:
        # Streamed row slabs; pin block 0 during the h==0 pass (A unused) so
        # no redundant full pass over A is DMA'd.
        a_spec = pl.BlockSpec((1, TM, N_pad),
                              lambda h, i: (jnp.where(h == 0, 0, i), 0, 0))

    scratch = [pltpu.VMEM((N_pad, F_pad), a_dtype),     # cur0
               pltpu.VMEM((N_pad, F_pad), a_dtype)]     # cur1
    if a_resident:
        scratch += [pltpu.VMEM((num_tiles, TM, N_pad), a_dtype),  # resident A
                    pltpu.SemaphoreType.DMA(())]

    flops = 2 * K * N_pad * N_pad * F_pad + 2 * (K + 1) * N_pad * F_pad * O_pad
    hbm_bytes = ((1 if a_resident else K) * N_pad * N_pad * itm
                 + N_pad * F_pad * itm
                 + (K + 1) * F_pad * O_pad * itm
                 + O_pad * 4
                 + N_pad * O_pad * 4)

    kernel = functools.partial(_lgcn_kernel, K=K, TM=TM, a_resident=a_resident)
    out = pl.pallas_call(
        kernel,
        out_shape=jax.ShapeDtypeStruct((N_pad, O_pad), jnp.float32),
        grid=(K + 1, num_tiles),
        in_specs=[
            a_spec,
            # x tiles consumed only at h==0; pinned to block 0 afterwards.
            pl.BlockSpec((TM, F_pad), lambda h, i: (jnp.where(h == 0, i, 0), 0)),
            # W streamed one hop block at a time (prefetched across hops).
            pl.BlockSpec((1, F_pad, O_pad), lambda h, i: (h, 0, 0)),
            pl.BlockSpec((1, O_pad), lambda h, i: (0, 0)),
        ],
        # Full-array output with a constant index map: VMEM-resident for the
        # whole grid, doubles as the f32 accumulator, written to HBM once.
        out_specs=pl.BlockSpec((N_pad, O_pad), lambda h, i: (0, 0)),
        scratch_shapes=scratch,
        compiler_params=pltpu.CompilerParams(
            # Hop axis is a sequential dependency; the row-tile axis shares the
            # per-core cur ping-pong scratch, so both stay "arbitrary".
            # TODO(synk): v7x 2-TC row split via VMEM_SHARED + core_barrier.
            dimension_semantics=("arbitrary", "arbitrary"),
            vmem_limit_bytes=vmem_limit,
        ),
        cost_estimate=pl.CostEstimate(
            flops=int(flops), transcendentals=0, bytes_accessed=int(hbm_bytes)),
    )(a_pad, x_pad, w_pad, b_pad)

    return out[:N, :O]


# ---------------------------------------------------------------------------
# Pure-JAX references.
#   a_dtype=float32  -> exact f32 LGCN math.
#   a_dtype=bfloat16 -> same quantization policy as the kernel (A/x/W/cur in
#                       bf16, f32 accumulation), for a tight correctness check.
# ---------------------------------------------------------------------------
def lgcn_reference(feature, edge_index, weight, bias, *, K: int,
                   a_dtype=jnp.float32):
    N, F = feature.shape
    O = weight.shape[0]
    f32 = jnp.float32
    hp = jax.lax.Precision.HIGHEST
    A = _gcn_adjacency(edge_index, N).astype(a_dtype).astype(f32)
    cur = feature.astype(a_dtype).astype(f32)
    Wq = weight.T.reshape(K + 1, F, O).astype(a_dtype).astype(f32)
    out = jnp.dot(cur, Wq[0], precision=hp)
    for k in range(1, K + 1):
        cur = jnp.dot(A, cur, precision=hp).astype(a_dtype).astype(f32)
        out = out + jnp.dot(cur, Wq[k], precision=hp)
    return out + bias.astype(f32)


def _make_inputs(key, N, F, O, K, E):
    k_feat, k_src, k_dst, k_w, k_b = jax.random.split(key, 5)
    feature = jax.random.normal(k_feat, (N, F), dtype=jnp.float32)
    edge_index = jnp.stack([
        jax.random.randint(k_src, (E,), 0, N, dtype=jnp.int32),
        jax.random.randint(k_dst, (E,), 0, N, dtype=jnp.int32),
    ], axis=0)
    fan_in = F * (K + 1)
    bound = 1.0 / (fan_in ** 0.5)
    weight = jax.random.uniform(k_w, (O, fan_in), jnp.float32, -bound, bound)
    bias = jax.random.uniform(k_b, (O,), jnp.float32, -bound, bound)
    return feature, edge_index, weight, bias


if __name__ == "__main__":
    key = jax.random.PRNGKey(0)
    k1, k2 = jax.random.split(key)

    # --- Test 1: LGCN defaults at small shapes (single tile, resident-A path:
    #     pl.ANY input + one-shot manual DMA into single-buffered scratch) ----
    N, F, O, K, E = 16, 8, 4, 8, 32
    feature, edge_index, weight, bias = _make_inputs(k1, N, F, O, K, E)
    out = jax.block_until_ready(
        lgcn_forward(feature, edge_index, weight, bias, K=K))
    assert out.shape == (N, O)
    ref_q = lgcn_reference(feature, edge_index, weight, bias, K=K,
                           a_dtype=jnp.bfloat16)
    ref_f = lgcn_reference(feature, edge_index, weight, bias, K=K,
                           a_dtype=jnp.float32)
    assert jnp.allclose(out, ref_q, atol=1e-3, rtol=1e-3), \
        "mismatch vs matched-precision (bf16) reference"
    # Looser bound vs pure-f32 math: bf16 A/x/W over K=8 hops (f32 accumulation).
    assert jnp.allclose(out, ref_f, atol=5e-2, rtol=5e-2), \
        "mismatch vs f32 reference beyond bf16-propagation tolerance"

    # --- Test 2: multi row tile + streamed (non-resident) A_hat path ---------
    N2, F2, O2, K2, E2 = 384, 8, 4, 3, 1536
    f2, ei2, w2, b2 = _make_inputs(k2, N2, F2, O2, K2, E2)
    out2 = jax.block_until_ready(
        lgcn_forward(f2, ei2, w2, b2, K=K2, a_resident=False))
    assert out2.shape == (N2, O2)
    ref2_q = lgcn_reference(f2, ei2, w2, b2, K=K2, a_dtype=jnp.bfloat16)
    ref2_f = lgcn_reference(f2, ei2, w2, b2, K=K2, a_dtype=jnp.float32)
    assert jnp.allclose(out2, ref2_q, atol=1e-3, rtol=1e-3), \
        "mismatch vs matched-precision reference (streamed-A path)"
    assert jnp.allclose(out2, ref2_f, atol=5e-2, rtol=5e-2), \
        "mismatch vs f32 reference (streamed-A path)"

    print("KERNEL_OK")
</pallas_src>

<mosaic_0001>
module attributes {stable_mosaic.version = 11 : i64} {
  func.func @_lgcn_kernel(%arg0: i32, %arg1: i32, %arg2: memref<1x128x128xbf16, #tpu.memory_space<any>>, %arg3: memref<128x128xbf16, #tpu.memory_space<vmem>>, %arg4: memref<1x128x128xbf16, #tpu.memory_space<vmem>>, %arg5: memref<1x128xf32, #tpu.memory_space<vmem>>, %arg6: memref<128x128xf32, #tpu.memory_space<vmem>>, %arg7: memref<128x128xbf16, #tpu.memory_space<vmem>>, %arg8: memref<128x128xbf16, #tpu.memory_space<vmem>>, %arg9: memref<1x128x128xbf16, #tpu.memory_space<vmem>>, %arg10: memref<!tpu.dma_semaphore, #tpu.memory_space<semaphore_mem>>) attributes {dimension_semantics = [#tpu.dimension_semantics<arbitrary>, #tpu.dimension_semantics<arbitrary>], iteration_bounds = array<i64: 9, 1>, scalar_prefetch = 0 : i64, scratch_operands = 4 : i64, tpu.core_type = #tpu.core_type<tc>, window_params = [{}, {transform_indices = @transform_1, window_bounds = array<i64: 128, 128>}, {transform_indices = @transform_2, window_bounds = array<i64: 1, 128, 128>}, {pipeline_mode = #tpu.pipeline_mode<synchronous>, transform_indices = @transform_3, window_bounds = array<i64: 1, 128>}, {pipeline_mode = #tpu.pipeline_mode<synchronous>, transform_indices = @transform_4, window_bounds = array<i64: 128, 128>}]} {
    %c128_i32 = arith.constant 128 : i32
    %0 = arith.muli %arg1, %c128_i32 : i32
    %1 = tpu.assume_multiple %0, 128 : i32
    %c0_i32 = arith.constant 0 : i32
    %2 = arith.cmpi eq, %arg0, %c0_i32 : i32
    %c0_i32_0 = arith.constant 0 : i32
    %3 = arith.cmpi eq, %arg1, %c0_i32_0 : i32
    %4 = arith.andi %2, %3 : i1
    %5 = arith.extui %4 : i1 to i32
    %c0_i32_1 = arith.constant 0 : i32
    %6 = arith.cmpi ne, %5, %c0_i32_1 : i32
    scf.if %6 {
      tpu.enqueue_dma source(%arg2 : memref<1x128x128xbf16, #tpu.memory_space<any>>) target(%arg9 : memref<1x128x128xbf16, #tpu.memory_space<vmem>>) target_semaphore(%arg10 : memref<!tpu.dma_semaphore, #tpu.memory_space<semaphore_mem>>)
    } else {
    }
    %c1_i32 = arith.constant 1 : i32
    %7 = arith.cmpi eq, %arg0, %c1_i32 : i32
    %c0_i32_2 = arith.constant 0 : i32
    %8 = arith.cmpi eq, %arg1, %c0_i32_2 : i32
    %9 = arith.andi %7, %8 : i1
    %10 = arith.extui %9 : i1 to i32
    %c0_i32_3 = arith.constant 0 : i32
    %11 = arith.cmpi ne, %10, %c0_i32_3 : i32
    scf.if %11 {
      tpu.wait_dma2 semaphore(%arg10 : memref<!tpu.dma_semaphore, #tpu.memory_space<semaphore_mem>>) src(%arg2 : memref<1x128x128xbf16, #tpu.memory_space<any>>) dst(%arg9 : memref<1x128x128xbf16, #tpu.memory_space<vmem>>)
    } else {
    }
    %c0_i32_4 = arith.constant 0 : i32
    %12 = arith.cmpi eq, %arg0, %c0_i32_4 : i32
    %13 = arith.extui %12 : i1 to i32
    %c0_i32_5 = arith.constant 0 : i32
    %14 = arith.cmpi ne, %13, %c0_i32_5 : i32
    scf.if %14 {
      %c0 = arith.constant 0 : index
      %c0_23 = arith.constant 0 : index
      %45 = vector.load %arg3[%c0, %c0_23] : memref<128x128xbf16, #tpu.memory_space<vmem>>, vector<128x128xbf16>
      %46 = arith.index_cast %1 : i32 to index
      %c0_24 = arith.constant 0 : index
      %47 = vector.load %arg7[%46, %c0_24] : memref<128x128xbf16, #tpu.memory_space<vmem>>, vector<128x128xbf16>
      tpu.vector_store %arg7[%46, %c0_24], %45 {strides = array<i32>} : memref<128x128xbf16, #tpu.memory_space<vmem>>, vector<128x128xbf16>,
      %c0_25 = arith.constant 0 : index
      %c0_26 = arith.constant 0 : index
      %c0_27 = arith.constant 0 : index
      %48 = vector.load %arg4[%c0_25, %c0_26, %c0_27] : memref<1x128x128xbf16, #tpu.memory_space<vmem>>, vector<1x128x128xbf16>
      %49 = vector.shape_cast %48 : vector<1x128x128xbf16> to vector<128x128xbf16>
      %cst = arith.constant dense<0.000000e+00> : vector<128x128xf32>
      %50 = tpu.matmul %45, %49, %cst {dimension_numbers = #tpu.dot_dimension_numbers<[1], [0], [0], [1], [0, 0, 1, 1], [], []>} : vector<128x128xbf16>, vector<128x128xbf16>, vector<128x128xf32> -> vector<128x128xf32>
      %c0_28 = arith.constant 0 : index
      %c0_29 = arith.constant 0 : index
      %51 = vector.load %arg5[%c0_28, %c0_29] : memref<1x128xf32, #tpu.memory_space<vmem>>, vector<1x128xf32>
      %52 = vector.broadcast %51 : vector<1x128xf32> to vector<128x128xf32>
      %53 = arith.addf %50, %52 : vector<128x128xf32>
      %54 = arith.index_cast %1 : i32 to index
      %c0_30 = arith.constant 0 : index
      %55 = vector.load %arg6[%54, %c0_30] : memref<128x128xf32, #tpu.memory_space<vmem>>, vector<128x128xf32>
      tpu.vector_store %arg6[%54, %c0_30], %53 {strides = array<i32>} : memref<128x128xf32, #tpu.memory_space<vmem>>, vector<128x128xf32>,
    } else {
    }
    %c0_i32_6 = arith.constant 0 : i32
    %15 = arith.cmpi sgt, %arg0, %c0_i32_6 : i32
    %c2_i32 = arith.constant 2 : i32
    %c0_i32_7 = arith.constant 0 : i32
    %16 = arith.cmpi eq, %c2_i32, %c0_i32_7 : i32
    %c1_i32_8 = arith.constant 1 : i32
    %17 = arith.select %16, %c1_i32_8, %c2_i32 : i32
    %18 = arith.remsi %arg0, %17 : i32
    %c0_i32_9 = arith.constant 0 : i32
    %19 = arith.cmpi ne, %18, %c0_i32_9 : i32
    %c0_i32_10 = arith.constant 0 : i32
    %20 = arith.cmpi slt, %18, %c0_i32_10 : i32
    %c0_i32_11 = arith.constant 0 : i32
    %21 = arith.cmpi slt, %17, %c0_i32_11 : i32
    %22 = arith.xori %20, %21 : i1
    %23 = arith.andi %22, %19 : i1
    %24 = arith.addi %18, %17 : i32
    %25 = arith.select %23, %24, %18 : i32
    %c1_i32_12 = arith.constant 1 : i32
    %26 = arith.cmpi eq, %25, %c1_i32_12 : i32
    %27 = arith.andi %15, %26 : i1
    %28 = arith.extui %27 : i1 to i32
    %c0_i32_13 = arith.constant 0 : i32
    %29 = arith.cmpi ne, %28, %c0_i32_13 : i32
    scf.if %29 {
      %45 = arith.index_cast %arg1 : i32 to index
      %c0 = arith.constant 0 : index
      %c0_23 = arith.constant 0 : index
      %46 = vector.load %arg9[%45, %c0, %c0_23] : memref<1x128x128xbf16, #tpu.memory_space<vmem>>, vector<1x128x128xbf16>
      %47 = vector.shape_cast %46 : vector<1x128x128xbf16> to vector<128x128xbf16>
      %c0_24 = arith.constant 0 : index
      %c0_25 = arith.constant 0 : index
      %48 = vector.load %arg7[%c0_24, %c0_25] : memref<128x128xbf16, #tpu.memory_space<vmem>>, vector<128x128xbf16>
      %cst = arith.constant dense<0.000000e+00> : vector<128x128xf32>
      %49 = tpu.matmul %47, %48, %cst {dimension_numbers = #tpu.dot_dimension_numbers<[1], [0], [0], [1], [0, 0, 1, 1], [], []>} : vector<128x128xbf16>, vector<128x128xbf16>, vector<128x128xf32> -> vector<128x128xf32>
      %50 = arith.truncf %49 : vector<128x128xf32> to vector<128x128xbf16>
      %c8_i32 = arith.constant 8 : i32
      %51 = arith.cmpi slt, %arg0, %c8_i32 : i32
      %52 = arith.extui %51 : i1 to i32
      %c0_i32_26 = arith.constant 0 : i32
      %53 = arith.cmpi ne, %52, %c0_i32_26 : i32
      scf.if %53 {
        %62 = arith.index_cast %1 : i32 to index
        %c0_33 = arith.constant 0 : index
        %63 = vector.load %arg8[%62, %c0_33] : memref<128x128xbf16, #tpu.memory_space<vmem>>, vector<128x128xbf16>
        tpu.vector_store %arg8[%62, %c0_33], %50 {strides = array<i32>} : memref<128x128xbf16, #tpu.memory_space<vmem>>, vector<128x128xbf16>,
      } else {
      }
      %54 = arith.index_cast %1 : i32 to index
      %c0_27 = arith.constant 0 : index
      %55 = vector.load %arg6[%54, %c0_27] : memref<128x128xf32, #tpu.memory_space<vmem>>, vector<128x128xf32>
      %c0_28 = arith.constant 0 : index
      %c0_29 = arith.constant 0 : index
      %c0_30 = arith.constant 0 : index
      %56 = vector.load %arg4[%c0_28, %c0_29, %c0_30] : memref<1x128x128xbf16, #tpu.memory_space<vmem>>, vector<1x128x128xbf16>
      %57 = vector.shape_cast %56 : vector<1x128x128xbf16> to vector<128x128xbf16>
      %cst_31 = arith.constant dense<0.000000e+00> : vector<128x128xf32>
      %58 = tpu.matmul %50, %57, %cst_31 {dimension_numbers = #tpu.dot_dimension_numbers<[1], [0], [0], [1], [0, 0, 1, 1], [], []>} : vector<128x128xbf16>, vector<128x128xbf16>, vector<128x128xf32> -> vector<128x128xf32>
      %59 = arith.addf %55, %58 : vector<128x128xf32>
      %60 = arith.index_cast %1 : i32 to index
      %c0_32 = arith.constant 0 : index
      %61 = vector.load %arg6[%60, %c0_32] : memref<128x128xf32, #tpu.memory_space<vmem>>, vector<128x128xf32>
      tpu.vector_store %arg6[%60, %c0_32], %59 {strides = array<i32>} : memref<128x128xf32, #tpu.memory_space<vmem>>, vector<128x128xf32>,
    } else {
    }
    %c0_i32_14 = arith.constant 0 : i32
    %30 = arith.cmpi sgt, %arg0, %c0_i32_14 : i32
    %c2_i32_15 = arith.constant 2 : i32
    %c0_i32_16 = arith.constant 0 : i32
    %31 = arith.cmpi eq, %c2_i32_15, %c0_i32_16 : i32
    %c1_i32_17 = arith.constant 1 : i32
    %32 = arith.select %31, %c1_i32_17, %c2_i32_15 : i32
    %33 = arith.remsi %arg0, %32 : i32
    %c0_i32_18 = arith.constant 0 : i32
    %34 = arith.cmpi ne, %33, %c0_i32_18 : i32
    %c0_i32_19 = arith.constant 0 : i32
    %35 = arith.cmpi slt, %33, %c0_i32_19 : i32
    %c0_i32_20 = arith.constant 0 : i32
    %36 = arith.cmpi slt, %32, %c0_i32_20 : i32
    %37 = arith.xori %35, %36 : i1
    %38 = arith.andi %37, %34 : i1
    %39 = arith.addi %33, %32 : i32
    %40 = arith.select %38, %39, %33 : i32
    %c0_i32_21 = arith.constant 0 : i32
    %41 = arith.cmpi eq, %40, %c0_i32_21 : i32
    %42 = arith.andi %30, %41 : i1
    %43 = arith.extui %42 : i1 to i32
    %c0_i32_22 = arith.constant 0 : i32
    %44 = arith.cmpi ne, %43, %c0_i32_22 : i32
    scf.if %44 {
      %45 = arith.index_cast %arg1 : i32 to index
      %c0 = arith.constant 0 : index
      %c0_23 = arith.constant 0 : index
      %46 = vector.load %arg9[%45, %c0, %c0_23] : memref<1x128x128xbf16, #tpu.memory_space<vmem>>, vector<1x128x128xbf16>
      %47 = vector.shape_cast %46 : vector<1x128x128xbf16> to vector<128x128xbf16>
      %c0_24 = arith.constant 0 : index
      %c0_25 = arith.constant 0 : index
      %48 = vector.load %arg8[%c0_24, %c0_25] : memref<128x128xbf16, #tpu.memory_space<vmem>>, vector<128x128xbf16>
      %cst = arith.constant dense<0.000000e+00> : vector<128x128xf32>
      %49 = tpu.matmul %47, %48, %cst {dimension_numbers = #tpu.dot_dimension_numbers<[1], [0], [0], [1], [0, 0, 1, 1], [], []>} : vector<128x128xbf16>, vector<128x128xbf16>, vector<128x128xf32> -> vector<128x128xf32>
      %50 = arith.truncf %49 : vector<128x128xf32> to vector<128x128xbf16>
      %c8_i32 = arith.constant 8 : i32
      %51 = arith.cmpi slt, %arg0, %c8_i32 : i32
      %52 = arith.extui %51 : i1 to i32
      %c0_i32_26 = arith.constant 0 : i32
      %53 = arith.cmpi ne, %52, %c0_i32_26 : i32
      scf.if %53 {
        %62 = arith.index_cast %1 : i32 to index
        %c0_33 = arith.constant 0 : index
        %63 = vector.load %arg7[%62, %c0_33] : memref<128x128xbf16, #tpu.memory_space<vmem>>, vector<128x128xbf16>
        tpu.vector_store %arg7[%62, %c0_33], %50 {strides = array<i32>} : memref<128x128xbf16, #tpu.memory_space<vmem>>, vector<128x128xbf16>,
      } else {
      }
      %54 = arith.index_cast %1 : i32 to index
      %c0_27 = arith.constant 0 : index
      %55 = vector.load %arg6[%54, %c0_27] : memref<128x128xf32, #tpu.memory_space<vmem>>, vector<128x128xf32>
      %c0_28 = arith.constant 0 : index
      %c0_29 = arith.constant 0 : index
      %c0_30 = arith.constant 0 : index
      %56 = vector.load %arg4[%c0_28, %c0_29, %c0_30] : memref<1x128x128xbf16, #tpu.memory_space<vmem>>, vector<1x128x128xbf16>
      %57 = vector.shape_cast %56 : vector<1x128x128xbf16> to vector<128x128xbf16>
      %cst_31 = arith.constant dense<0.000000e+00> : vector<128x128xf32>
      %58 = tpu.matmul %50, %57, %cst_31 {dimension_numbers = #tpu.dot_dimension_numbers<[1], [0], [0], [1], [0, 0, 1, 1], [], []>} : vector<128x128xbf16>, vector<128x128xbf16>, vector<128x128xf32> -> vector<128x128xf32>
      %59 = arith.addf %55, %58 : vector<128x128xf32>
      %60 = arith.index_cast %1 : i32 to index
      %c0_32 = arith.constant 0 : index
      %61 = vector.load %arg6[%60, %c0_32] : memref<128x128xf32, #tpu.memory_space<vmem>>, vector<128x128xf32>
      tpu.vector_store %arg6[%60, %c0_32], %59 {strides = array<i32>} : memref<128x128xf32, #tpu.memory_space<vmem>>, vector<128x128xf32>,
    } else {
    }
    return
  }
  func.func @transform_1(%arg0: i32, %arg1: i32) -> (i32, i32) {
    %c0_i32 = arith.constant 0 : i32
    %0 = arith.cmpi eq, %arg0, %c0_i32 : i32
    %c0_i32_0 = arith.constant 0 : i32
    %1 = arith.select %0, %arg1, %c0_i32_0 : i32
    %c0_i32_1 = arith.constant 0 : i32
    %c0_i32_2 = arith.constant 0 : i32
    return %1, %c0_i32_1 : i32, i32
  }
  func.func @transform_2(%arg0: i32, %arg1: i32) -> (i32, i32, i32) {
    %c0_i32 = arith.constant 0 : i32
    %c0_i32_0 = arith.constant 0 : i32
    %c0_i32_1 = arith.constant 0 : i32
    return %arg0, %c0_i32, %c0_i32_0 : i32, i32, i32
  }
  func.func @transform_3(%arg0: i32, %arg1: i32) -> (i32, i32) {
    %c0_i32 = arith.constant 0 : i32
    %c0_i32_0 = arith.constant 0 : i32
    %c0_i32_1 = arith.constant 0 : i32
    return %c0_i32, %c0_i32_0 : i32, i32
  }
  func.func @transform_4(%arg0: i32, %arg1: i32) -> (i32, i32) {
    %c0_i32 = arith.constant 0 : i32
    %c0_i32_0 = arith.constant 0 : i32
    %c0_i32_1 = arith.constant 0 : i32
    return %c0_i32, %c0_i32_0 : i32, i32
  }
}

</mosaic_0001>

<bundles_post_ra>
// kernel: tpu_custom_call.1
= control target key start
LH: loop header
LB: loop body
LE: loop exit
PB: predicated region body
PF: predicated region fallthrough
CT: control target
= control target key end

     0   :  { %9 = vsyncpa [#allocation7], 0  ;;  %s2254_s0 = inlined_call_operand.hbm [shape: bf16[1,128,128], index: 0, kind: input, shape index: {}]   ;;  %s2255_s1 = inlined_call_operand.hbm [shape: bf16[128,128], index: 1, kind: input, shape index: {}]   ;;  %s2256_s2 = inlined_call_operand.hbm [shape: bf16[9,128,128], index: 2, kind: input, shape index: {}]   ;;  %s2257_s3 = inlined_call_operand.vmem [shape: f32[1,128], index: 3, kind: input, shape index: {}]   ;;  %s2258_s4 = inlined_call_operand.hbm [shape: f32[128,128], index: 4, kind: output, shape index: {}]  }
   0x1   :  { %11 = vsyncpa [#allocation7 + $0x1], 0 }
   0x2   :  { %12 = vsyncpa [#allocation10], 0 }
   0x3   :  { %14 = vsyncpa [#allocation10 + $0x1], 0 }
   0x4   :  { %15 = vsyncpa [#allocation8], 0  ;;  %s2001_s15 = smov 0   ;;  %s2003_s16 = smov 0  }
   0x5   :  { %s2005_s17 = smov 0   ;;  %s2007_s18 = smov 0  }
   0x6   :  { %s2009_s19 = smov 0   ;;  %s2011_s20 = smov 0  }
   0x7 LB: > { %s1368_s21 = sadd.s32 4294967295, %s1966_s20   ;;  %p77_p0 = scmp.ne.s32.totalorder %s1954_s17, %s1950_s16  ;;  %s1966_s20 = sphi %s2011_s20, %s21_s20   ;;  %s1962_s19 = sphi %s2009_s19, %s2276_s19   ;;  %s1958_s18 = sphi %s2007_s18, %s2275_s18   ;;  %s1954_s17 = sphi %s2005_s17, %s2274_s17   ;;  %s1950_s16 = sphi %s2003_s16, %s2273_s16   ;;  %s1946_s15 = sphi %s2001_s15, %s2272_s15  }
   0x8   : > { %p78_p1 = scmp.eq.s32.totalorder %s1966_s20, 0  ;;  %p83_p2 = scmp.ne.s32.totalorder %s1950_s16, %s1946_s15 }
   0x9   : > { %p2036_p3 = scmp.eq.s32.totalorder %s1368_s21, 0  ;;  %p1702_p5 = scmp.lt.s32.totalorder %s1966_s20, 9 }
   0xa   : > { %p79_p4 = por %p78_p1, %p77_p0  ;;  %s1968_s25 = smov [#allocation6]  }
   0xb   : > { %s2263_s22 = scalar_select %p2036_p3, 1, 0 }
   0xc   : > { %p2043_p6 = por %p2036_p3, %p83_p2  ;;  %p2047_p7 = pnand %p1702_p5, %p78_p1 }
   0xd   : > { %s165_s26 = sshll.u32 %s1968_s25, 4  ;;  %p2051_p8 = pnand %p1702_p5, %p79_p4  ;;  %s166_s26 = int_to_ptr.vmem [resolvable:$true] %s165_s26 }
   0xe   : > { %s2264_s23 = scalar_select %p2043_p6, 1, 0 }
   0xf   : > { %s2266_s27 = scalar_select %p2051_p8, 1, 0 }
  0x10   : > { %s1794_s30 = scalar_lea.hbm %s2255_s1, 1024  ;;  %p1796_p10 = pneg %p2047_p7 }
  0x11   : > { %p1795_p9 = scmp.ne.s32.totalorder %s2255_s1, %s1794_s30  ;;  %p1801_p13 = scmp.lt.u32.totalorder %s1794_s30, %s2255_s1 }
  0x13   : > { %p1797_p11 = pnand %p1796_p10, %p1795_p9 }
  0x15   : > { %p1798_p12 = pneg %p1797_p11 }
  0x17   : > { %p1803_p0 = pnand %p1801_p13, %p1798_p12 }
  0x19   : > { %1806 = shalt.err (!%p1803_p0)
}
  0x1a   : > { %s1807_s9 = scalar_lea.vmem %s166_s26, 1024  ;;  %s1814_s10 = scalar_lea.vmem %s166_s26, 2048 }
  0x1b   : > { %p1808_p1 = scmp.ne.s32.totalorder %s166_s26, %s1807_s9  ;;  %p1815_p5 = scmp.lt.s32.totalorder %s166_s26, %s166_s26 }
  0x1c   : > { %p1816_p6 = scmp.lt.s32.totalorder %s1814_s10, %s1807_s9 }
  0x1d   : > { %p1810_p2 = pnand %p1808_p1, %p1796_p10 }
  0x1e   : > { %p1817_p3 = por %p1816_p6, %p1815_p5 }
  0x1f   : > { %p1811_p4 = pneg %p1810_p2 }
  0x21   : > { %p1818_p8 = pnand %p1817_p3, %p1811_p4 }
  0x23   : > { %1821 = shalt.err (!%p1818_p8)
}
  0x24   : > { %s1969_s11 = smov 64   ;;  %s1970_s12 = smov 4  }
  0x25   : > { %1698 = dma.hbm_to_vmem [thread:$0]  (!%p2047_p7), %s2255_s1, 1024, %s166_s26, [#allocation7], %s1969_s11, %s1969_s11, %s1970_s12  }
  0x26   : > { %p1375_p3 = scmp.ge.s32.totalorder %s1966_s20, 1  ;;  %p194_p6 = scmp.lt.s32.totalorder %s1966_s20, 10 }
  0x27   : > { %s70_s15 = sadd.s32 1, %s1954_s17  ;;  %s33_s28 = sadd.s32 1, %s1962_s19 }
  0x28   : > { %p2077_p8 = pnand %p1375_p3, %p194_p6  ;;  %p35_p9 = scmp.ge.s32.totalorder %s33_s28, 9 }
  0x29   : > { %s175_s24 = sand.u32 1, %s1954_s17   ;;  %s1424_s30 = sshll.u32 %s1962_s19, 10 }
  0x2a   : > { %s1372_s29 = sshll.u32 %s175_s24, 6  ;;  %s2278_s28 = smov (%p35_p9, %s33_s28), 0 }
  0x2b   : > { %s67_s5 = ssub.s32 %s1962_s19, %s2278_s28  ;;  %s2091_s7 = scalar_lea.hbm %s2256_s2, %s1424_s30 }
  0x2c   : > { %p68_p7 = scmp.eq.s32.totalorder %s67_s5, 0  ;;  %s179_s8 = scalar_lea.vmem [#allocation9], %s1372_s29 }
  0x2d   : > { %s186_s9 = sshll.u32 %s179_s8, 4  ;;  %s2098_s13 = scalar_lea.sflag [#allocation10], %s175_s24  ;;  %s2093_s9 = int_to_ptr.vmem [resolvable:$true] %s186_s9 }
  0x2e   : > { %s2096_s10 = scalar_select %p68_p7, %s1954_s17, %s70_s15  }
  0x2f   : > { %s1822_s14 = scalar_lea.hbm %s2091_s7, 1024  ;;  %p2268_p11 = scmp.ne.s32.totalorder %s2266_s27, 0 }
  0x30   : > { %p1823_p10 = scmp.ne.s32.totalorder %s2091_s7, %s1822_s14  ;;  %s1827_s5 = scalar_lea.hbm %s2256_s2, 9216 }
  0x31   : > { %p1824_p12 = pneg %p2268_p11  ;;  %p1828_p1 = scmp.lt.u32.totalorder %s2091_s7, %s2256_s2 }
  0x32   : > { %p1829_p2 = scmp.lt.u32.totalorder %s1827_s5, %s1822_s14  ;;  %p1831_p5 = scmp.lt.u32.totalorder %s1822_s14, %s2091_s7 }
  0x33   : > { %p1825_p13 = pnand %p1824_p12, %p1823_p10 }
  0x34   : > { %p1830_p4 = por %p1829_p2, %p1828_p1 }
  0x35   : > { %p1826_p0 = pneg %p1825_p13 }
  0x36   : > { %p1832_p3 = por %p1831_p5, %p1830_p4 }
  0x38   : > { %p1833_p6 = pnand %p1832_p3, %p1826_p0 }
  0x3a   : > { %1836 = shalt.err (!%p1833_p6)
}
  0x3b   : > { %s1837_s15 = scalar_lea.vmem %s2093_s9, 1024  ;;  %s1971_s24 = smov [#allocation9]  }
  0x3c   : > { %p1838_p9 = scmp.ne.s32.totalorder %s2093_s9, %s1837_s15  ;;  %s1842_s8 = sshll.u32 %s1971_s24, 4  ;;  %s1843_s8 = int_to_ptr.vmem [resolvable:$false] %s1842_s8 }
  0x3d   : > { %s1844_s30 = scalar_lea.vmem %s1843_s8, 2048  ;;  %p1845_p13 = scmp.lt.s32.totalorder %s2093_s9, %s1843_s8 }
  0x3e   : > { %p1840_p7 = pnand %p1838_p9, %p1824_p12  ;;  %p1846_p1 = scmp.lt.s32.totalorder %s1844_s30, %s1837_s15 }
  0x40   : > { %p1841_p10 = pneg %p1840_p7  ;;  %p1847_p2 = por %p1846_p1, %p1845_p13 }
  0x42   : > { %p1848_p4 = pnand %p1847_p2, %p1841_p10 }
  0x44   : > { %1851 = shalt.err (!%p1848_p4)
}
  0x45   : > { %1701 = dma.hbm_to_vmem [thread:$0]  (!%p2268_p11), %s2091_s7, 1024, %s2093_s9, %s2098_s13, %s1969_s11, %s1969_s11, %s1970_s12  }
  0x46   : > { %198 = sbr.rel (%p2077_p8) target bundleno = 1506 (0x5e2), region = 32  ;;  %p2269_p12 = scmp.ne.s32.totalorder (!%p2077_p8), %s2263_s22, 0 }
  0x4d   : > { %1929 = dma.done.wait (%p2269_p12), [#allocation7], 1024  }
  0x4e   : > { %1931 = vsyncadd (%p2269_p12), [#allocation7], 4294966272  ;;  %s209_s14 = sand.u32 1, %s1950_s16   ;;  %p2270_p0 = scmp.ne.s32.totalorder %s2264_s23, 0 }
  0x4f   : > { %s1377_s27 = sshll.u32 %s209_s14, 6  ;;  %s210_s26 = scalar_lea.sflag [#allocation10], %s209_s14 }
  0x50   : > { %s2136_s5 = scalar_lea.vmem [#allocation9], %s1377_s27 }
  0x51   : > { %1933 = dma.done.wait (%p2270_p0), %s210_s26, 1024  }
  0x52   : > { %1935 = vsyncadd (%p2270_p0), %s210_s26, 4294966272  ;;  %p241_p8 = scmp.eq.s32.totalorder %s1958_s18, 0  ;;  %s1972_s11 = smov [#allocation4]  }
  0x53   : > { %s254_s12 = sshll.u32 %s1972_s11, 4  ;;  %p258_p11 = scmp.eq.s32.totalorder %s1958_s18, 1  ;;  %s255_s12 = int_to_ptr.vmem [resolvable:$true] %s254_s12 }
  0x54   : > { %s1852_s7 = scalar_lea.hbm %s2254_s0, 1024 }
  0x55   : > { %p1853_p5 = scmp.ne.s32.totalorder %s2254_s0, %s1852_s7  ;;  %p1858_p9 = scmp.lt.u32.totalorder %s1852_s7, %s2254_s0 }
  0x57   : > { %p1854_p3 = pnand %p1853_p5, %p241_p8 }
  0x59   : > { %p1855_p6 = pneg %p1854_p3 }
  0x5b   : > { %p1860_p7 = pnand %p1858_p9, %p1855_p6 }
  0x5d   : > { %1863 = shalt.err (!%p1860_p7)  }
  0x5e   : > { %s1864_s6 = scalar_lea.vmem %s255_s12, 1024  ;;  %p1871_p2 = scmp.lt.s32.totalorder %s255_s12, %s255_s12 }
  0x5f   : > { %p1865_p10 = scmp.ne.s32.totalorder %s255_s12, %s1864_s6  ;;  %p1872_p4 = scmp.lt.s32.totalorder %s1864_s6, %s1864_s6 }
  0x61   : > { %p1866_p13 = pnand %p1865_p10, %p241_p8  ;;  %p1873_p12 = por %p1872_p4, %p1871_p2 }
  0x63   : > { %p1867_p1 = pneg %p1866_p13 }
  0x65   : > { %p1874_p0 = pnand %p1873_p12, %p1867_p1 }
  0x67   : > { %1877 = shalt.err (!%p1874_p0)  }
  0x68   : > { %1689 = dma.hbm_to_vmem [thread:$0]  (%p241_p8), %s2254_s0, 1024, %s255_s12, [#allocation5] }
  0x69   : > { %1937 = dma.done.wait (%p258_p11), [#allocation5], 1024 }
  0x6a   : > { %1939 = vsyncadd (%p258_p11), [#allocation5], 4294966272  ;;  %p1380_p5 = scmp.ne.s32.totalorder %s1958_s18, 0 }
  0x6b   : > { %v1762_v0 = vld [vmem:[%s2136_s5] sm:$0xff] (!%p1380_p5)   ;;  %v1763_v1 = vld [vmem:[%s2136_s5 + $0x8] sm:$0xff] (!%p1380_p5)   ;;  %v1764_v2 = vld [vmem:[%s2136_s5 + $0x10] sm:$0xff] (!%p1380_p5)  }
  0x6c   : > { %270 = sbr.rel (%p1380_p5) target bundleno = 366 (0x16e), region = 56  ;;  %1507 = vmatprep.subr.bf16.mxu0 (!%p1380_p5), %v1762_v0  ;;  %1667 = vmatprep.subr.bf16.mxu1 (!%p1380_p5), %v1762_v0  ;;  %v1765_v3 = vld [vmem:[%s2136_s5 + $0x18] sm:$0xff] (!%p1380_p5)   ;;  %v1770_v4 = vld [vmem:[#allocation6] sm:$0xff] (!%p1380_p5)   ;;  %v1772_v7 = vld [vmem:[#allocation6 + $0x8] sm:$0xff] (!%p1380_p5)  }
  0x6d   : > { %1508 = vmatpush3.bf16.msra.mxu0 (!%p1380_p5), %v1762_v0  ;;  %1675 = vmatpush3.bf16.msra.mxu1 (!%p1380_p5), %v1762_v0  ;;  %v1771_v5 = vld [vmem:[#allocation6 + $0x20] sm:$0xff] (!%p1380_p5)   ;;  %339 = vst [vmem:[#allocation2] sm:$0xff] (!%p1380_p5), %v1770_v4  ;;  %v1773_v8 = vld [vmem:[#allocation6 + $0x28] sm:$0xff] (!%p1380_p5)   ;;  %340 = vst [vmem:[#allocation2 + $0x8] sm:$0xff] (!%p1380_p5), %v1772_v7 }
  0x6e   : > { %1509 = vmatprep.subr.bf16.mxu0 (!%p1380_p5), %v1763_v1  ;;  %1668 = vmatprep.subr.bf16.mxu1 (!%p1380_p5), %v1763_v1  ;;  %v1766_v6 = vld [vmem:[%s2136_s5 + $0x20] sm:$0xff] (!%p1380_p5)   ;;  %343 = vst [vmem:[#allocation2 + $0x20] sm:$0xff] (!%p1380_p5), %v1771_v5  ;;  %v1774_v9 = vld [vmem:[#allocation6 + $0x10] sm:$0xff] (!%p1380_p5)   ;;  %344 = vst [vmem:[#allocation2 + $0x28] sm:$0xff] (!%p1380_p5), %v1773_v8 }
  0x6f   : > { %1523 = vmatprep.mubr.bf16.mxu0 (!%p1380_p5), %v1770_v4  ;;  %1531 = vmatprep.mubr.bf16.mxu1 (!%p1380_p5), %v1771_v5  ;;  %v1775_v10 = vld [vmem:[#allocation6 + $0x30] sm:$0xff] (!%p1380_p5)   ;;  %341 = vst [vmem:[#allocation2 + $0x10] sm:$0xff] (!%p1380_p5), %v1774_v9  ;;  %v1776_v11 = vld [vmem:[#allocation6 + $0x18] sm:$0xff] (!%p1380_p5)   ;;  %v1767_v13 = vld [vmem:[%s2136_s5 + $0x28] sm:$0xff] (!%p1380_p5)  }
  0x70   : > { %345 = vst [vmem:[#allocation2 + $0x30] sm:$0xff] (!%p1380_p5), %v1775_v10  ;;  %v1777_v12 = vld [vmem:[#allocation6 + $0x38] sm:$0xff] (!%p1380_p5)   ;;  %342 = vst [vmem:[#allocation2 + $0x18] sm:$0xff] (!%p1380_p5), %v1776_v11  ;;  %v1768_v14 = vld [vmem:[%s2136_s5 + $0x30] sm:$0xff] (!%p1380_p5)  }
  0x71   : > { %1510 = vmatpush3.bf16.msra.mxu0 (!%p1380_p5), %v1763_v1  ;;  %1676 = vmatpush3.bf16.msra.mxu1 (!%p1380_p5), %v1763_v1  ;;  %346 = vst [vmem:[#allocation2 + $0x38] sm:$0xff] (!%p1380_p5), %v1777_v12  ;;  %v1769_v15 = vld [vmem:[%s2136_s5 + $0x38] sm:$0xff] (!%p1380_p5)   ;;  %v1389_v16 = vld [vmem:[%s2257_s3] ss:$0 sm:$0xff] (!%p1380_p5) }
  0x72   : > { %1511 = vmatprep.subr.bf16.mxu0 (!%p1380_p5), %v1764_v2  ;;  %1669 = vmatprep.subr.bf16.mxu1 (!%p1380_p5), %v1764_v2 }
  0x75   : > { %1512 = vmatpush3.bf16.msra.mxu0 %v1764_v2  ;;  %1677 = vmatpush3.bf16.msra.mxu1 %v1764_v2 }
  0x76   : > { %1513 = vmatprep.subr.bf16.mxu0 %v1765_v3  ;;  %1670 = vmatprep.subr.bf16.mxu1 %v1765_v3 }
  0x79   : > { %1514 = vmatpush3.bf16.msra.mxu0 %v1765_v3  ;;  %1678 = vmatpush3.bf16.msra.mxu1 %v1765_v3 }
  0x7a   : > { %1515 = vmatprep.subr.bf16.mxu0 %v1766_v6  ;;  %1671 = vmatprep.subr.bf16.mxu1 %v1766_v6 }
  0x7d   : > { %1516 = vmatpush3.bf16.msra.mxu0 %v1766_v6  ;;  %1679 = vmatpush3.bf16.msra.mxu1 %v1766_v6 }
  0x7e   : > { %1517 = vmatprep.subr.bf16.mxu0 %v1767_v13  ;;  %1672 = vmatprep.subr.bf16.mxu1 %v1767_v13 }
  0x81   : > { %1518 = vmatpush3.bf16.msra.mxu0 %v1767_v13  ;;  %1680 = vmatpush3.bf16.msra.mxu1 %v1767_v13 }
  0x82   : > { %1519 = vmatprep.subr.bf16.mxu0 %v1768_v14  ;;  %1673 = vmatprep.subr.bf16.mxu1 %v1768_v14 }
  0x85   : > { %1520 = vmatpush3.bf16.msra.mxu0 %v1768_v14  ;;  %1681 = vmatpush3.bf16.msra.mxu1 %v1768_v14 }
  0x86   : > { %1521 = vmatprep.subr.bf16.mxu0 %v1769_v15  ;;  %1674 = vmatprep.subr.bf16.mxu1 %v1769_v15 }
  0x89   : > { %1522 = vmatpush3.bf16.msra.mxu0 %v1769_v15  ;;  %1682 = vmatpush3.bf16.msra.mxu1 %v1769_v15 }
  0x8c   : > { %1524 = vmatmul.mubr.bf16.vlgmr.msra.gmra.mrb[0].mxu0 %v1772_v7  ;;  %1532 = vmatmul.mubr.bf16.vlgmr.msra.gmra.mrb[0].mxu1 %v1773_v8 }
  0x8d   : > { %1527 = vmatprep.mubr.bf16.mxu0 %v1774_v9  ;;  %1535 = vmatprep.mubr.bf16.mxu1 %v1775_v10 }
  0x94   : > { %1528 = vmatmul.mubr.bf16.gmra.mrb[4].mxu0 %v1776_v11  ;;  %1536 = vmatmul.mubr.bf16.gmra.mrb[4].mxu1 %v1777_v12 }
 0x15f   : > { %v1525_v17 = vpop.f32.mrb[0].mxu0  ;;  %v1533_v18 = vpop.f32.mrb[0].mxu1 }
 0x160   : > { %v461_v19 = vadd.f32 %v1525_v17, %v1389_v16  ;;  %v493_v20 = vadd.f32 %v1533_v18, %v1389_v16  ;;  %v452_v21 = vpop.f32.mrb[1].mxu0  ;;  %v484_v22 = vpop.f32.mrb[1].mxu1 }
 0x161   : > { %v453_v23 = vadd.f32 %v1389_v16, %v452_v21  ;;  %v485_v24 = vadd.f32 %v1389_v16, %v484_v22  ;;  %v1526_v25 = vpop.f32.mrb[2].mxu0  ;;  %v1534_v26 = vpop.f32.mrb[2].mxu1 }
 0x162   : > { %518 = vst [vmem:[#allocation11 + $0x10] sm:$0xff] %v461_v19  ;;  %526 = vst [vmem:[#allocation11 + $0x50] sm:$0xff] %v493_v20  ;;  %v464_v27 = vadd.f32 %v1526_v25, %v1389_v16  ;;  %v496_v28 = vadd.f32 %v1534_v26, %v1389_v16  ;;  %v455_v29 = vpop.f32.mrb[3].mxu0  ;;  %v487_v30 = vpop.f32.mrb[3].mxu1 }
 0x163   : > { %516 = vst [vmem:[#allocation11] sm:$0xff] %v453_v23  ;;  %524 = vst [vmem:[#allocation11 + $0x40] sm:$0xff] %v485_v24  ;;  %v456_v31 = vadd.f32 %v1389_v16, %v455_v29  ;;  %v488_v32 = vadd.f32 %v1389_v16, %v487_v30 }
 0x164   : > { %519 = vst [vmem:[#allocation11 + $0x18] sm:$0xff] %v464_v27  ;;  %527 = vst [vmem:[#allocation11 + $0x58] sm:$0xff] %v496_v28 }
 0x165   : > { %517 = vst [vmem:[#allocation11 + $0x8] sm:$0xff] %v456_v31  ;;  %525 = vst [vmem:[#allocation11 + $0x48] sm:$0xff] %v488_v32 }
 0x167   : > { %v1529_v33 = vpop.f32.mrb[4].mxu0  ;;  %v1537_v34 = vpop.f32.mrb[4].mxu1 }
 0x168   : > { %v477_v35 = vadd.f32 %v1529_v33, %v1389_v16  ;;  %v509_v36 = vadd.f32 %v1537_v34, %v1389_v16  ;;  %v468_v37 = vpop.f32.mrb[5].mxu0  ;;  %v500_v38 = vpop.f32.mrb[5].mxu1 }
 0x169   : > { %v469_v39 = vadd.f32 %v1389_v16, %v468_v37  ;;  %v501_v40 = vadd.f32 %v1389_v16, %v500_v38  ;;  %v1530_v41 = vpop.f32.mrb[6].mxu0  ;;  %v1538_v42 = vpop.f32.mrb[6].mxu1 }
 0x16a   : > { %522 = vst [vmem:[#allocation11 + $0x30] sm:$0xff] %v477_v35  ;;  %530 = vst [vmem:[#allocation11 + $0x70] sm:$0xff] %v509_v36  ;;  %v480_v43 = vadd.f32 %v1530_v41, %v1389_v16  ;;  %v512_v44 = vadd.f32 %v1538_v42, %v1389_v16  ;;  %v471_v45 = vpop.f32.mrb[7].mxu0  ;;  %v503_v46 = vpop.f32.mrb[7].mxu1 }
 0x16b   : > { %520 = vst [vmem:[#allocation11 + $0x20] sm:$0xff] %v469_v39  ;;  %528 = vst [vmem:[#allocation11 + $0x60] sm:$0xff] %v501_v40  ;;  %v472_v47 = vadd.f32 %v1389_v16, %v471_v45  ;;  %v504_v48 = vadd.f32 %v1389_v16, %v503_v46 }
 0x16c   : > { %523 = vst [vmem:[#allocation11 + $0x38] sm:$0xff] %v480_v43  ;;  %531 = vst [vmem:[#allocation11 + $0x78] sm:$0xff] %v512_v44 }
 0x16d   : > { %521 = vst [vmem:[#allocation11 + $0x28] sm:$0xff] %v472_v47  ;;  %529 = vst [vmem:[#allocation11 + $0x68] sm:$0xff] %v504_v48 }
 0x16e PF: > { %p533_p8 = scmp.lt.s32.totalorder %s1958_s18, 0  ;;  %s534_s14 = ssub.s32 0, %s1958_s18 }
 0x16f   : > { %s1398_s27 = smin.u32 %s1958_s18, %s534_s14  ;;  %p532_p3 = scmp.gt.s32.totalorder %s1958_s18, 0 }
 0x170   : > { %s536_s26 = sand.u32 1, %s1398_s27  }
 0x171   : > { %s537_s11 = ssub.s32 0, %s536_s26 }
 0x172   : > { %s2280_s11 = smov (!%p533_p8, %s537_s11), %s536_s26 }
 0x173   : > { %p1400_p11 = scmp.lt.s32.totalorder %s2280_s11, 0  ;;  %s543_s12 = sadd.s32 2, %s2280_s11 }
 0x175   : > { %s2282_s12 = smov (!%p1400_p11, %s543_s12), %s2280_s11 }
 0x176   : > { %p545_p6 = scmp.eq.s32.totalorder %s2282_s12, 1 }
 0x178   : > { %p546_p9 = pnand %p545_p6, %p532_p3 }
 0x179   : > { %v561_v49 = vld [vmem:[#allocation2] sm:$0xff] (!%p546_p9)  ;;  %v562_v50 = vld [vmem:[#allocation2 + $0x8] sm:$0xff] (!%p546_p9)  ;;  %v563_v52 = vld [vmem:[#allocation2 + $0x10] sm:$0xff] (!%p546_p9)  ;;  %p1401_p7 = scmp.ge.s32.totalorder (!%p546_p9), %s1958_s18, 8 }
 0x17a   : > { %549 = sbr.rel (%p546_p9) target bundleno = 927 (0x39f), region = 60  ;;  %1539 = vmatprep.subr.bf16.mxu0 (!%p546_p9), %v561_v49  ;;  %v553_v51 = vld [vmem:[#allocation4] sm:$0xff] (!%p546_p9)  ;;  %v564_v53 = vld [vmem:[#allocation2 + $0x18] sm:$0xff] (!%p546_p9)  ;;  %v566_v55 = vld [vmem:[#allocation2 + $0x28] sm:$0xff] (!%p546_p9) }
 0x17b   : > { %1540 = vmatpush3.bf16.msra.mxu0 (!%p546_p9), %v561_v49  ;;  %1555 = vmatprep.mubr.bf16.mxu0 (!%p546_p9), %v553_v51  ;;  %v565_v54 = vld [vmem:[#allocation2 + $0x20] sm:$0xff] (!%p546_p9)  ;;  %v567_v56 = vld [vmem:[#allocation2 + $0x30] sm:$0xff] (!%p546_p9)  ;;  %v568_v57 = vld [vmem:[#allocation2 + $0x38] sm:$0xff] (!%p546_p9) }
 0x17c   : > { %1541 = vmatprep.subr.bf16.mxu0 (!%p546_p9), %v562_v50  ;;  %v554_v58 = vld [vmem:[#allocation4 + $0x8] sm:$0xff] (!%p546_p9)  ;;  %v555_v59 = vld [vmem:[#allocation4 + $0x10] sm:$0xff] (!%p546_p9)  ;;  %v556_v60 = vld [vmem:[#allocation4 + $0x18] sm:$0xff] (!%p546_p9) }
 0x17d   : > { %v557_v61 = vld [vmem:[#allocation4 + $0x20] sm:$0xff] (!%p546_p9)  ;;  %v558_v62 = vld [vmem:[#allocation4 + $0x28] sm:$0xff] (!%p546_p9)  ;;  %v559_v63 = vld [vmem:[#allocation4 + $0x30] sm:$0xff] (!%p546_p9) }
 0x17e   : > { %v560_v0 = vld [vmem:[#allocation4 + $0x38] sm:$0xff] (!%p546_p9) }
 0x17f   : > { %1542 = vmatpush3.bf16.msra.mxu0 (!%p546_p9), %v562_v50 }
 0x180   : > { %1543 = vmatprep.subr.bf16.mxu0 (!%p546_p9), %v563_v52 }
 0x183   : > { %1544 = vmatpush3.bf16.msra.mxu0 %v563_v52 }
 0x184   : > { %1545 = vmatprep.subr.bf16.mxu0 %v564_v53 }
 0x187   : > { %1546 = vmatpush3.bf16.msra.mxu0 %v564_v53 }
 0x188   : > { %1547 = vmatprep.subr.bf16.mxu0 %v565_v54 }
 0x18b   : > { %1548 = vmatpush3.bf16.msra.mxu0 %v565_v54 }
 0x18c   : > { %1549 = vmatprep.subr.bf16.mxu0 %v566_v55 }
 0x18f   : > { %1550 = vmatpush3.bf16.msra.mxu0 %v566_v55 }
 0x190   : > { %1551 = vmatprep.subr.bf16.mxu0 %v567_v56 }
 0x193   : > { %1552 = vmatpush3.bf16.msra.mxu0 %v567_v56 }
 0x194   : > { %1553 = vmatprep.subr.bf16.mxu0 %v568_v57 }
 0x197   : > { %1554 = vmatpush3.bf16.msra.mxu0 %v568_v57 }
 0x19a   : > { %1556 = vmatmul.mubr.bf16.vlgmr.msra.gmra.mrb[0].mxu0 %v554_v58 }
 0x19b   : > { %1559 = vmatprep.mubr.bf16.mxu0 %v555_v59 }
 0x1a2   : > { %1560 = vmatmul.mubr.bf16.gmra.mrb[4].mxu0 %v556_v60 }
 0x1a3   : > { %1563 = vmatprep.mubr.bf16.mxu0 %v557_v61 }
 0x1aa   : > { %1564 = vmatmul.mubr.bf16.gmra.mrb[8].mxu0 %v558_v62 }
 0x1ab   : > { %1567 = vmatprep.mubr.bf16.mxu0 %v559_v63 }
 0x1b2   : > { %1568 = vmatmul.mubr.bf16.gmra.mrb[12].mxu0 %v560_v0 }
 0x26d   : > { %v1557_v1 = vpop.f32.mrb[0].mxu0 }
 0x26e   : > { %v603_v2 = vpop.f32.mrb[1].mxu0 }
 0x26f   : > { %v1558_v3 = vpop.f32.mrb[2].mxu0 }
 0x270   : > { %v667_v4 = vpack.c.bf16 %v1558_v3, %v1557_v1  ;;  %v606_v5 = vpop.f32.mrb[3].mxu0 }
 0x271   : > { %v666_v6 = vpack.c.bf16 %v606_v5, %v603_v2 }
 0x272   : > { %683 = vst [vmem:[#allocation3 + $0x8] sm:$0xff] (!%p1401_p7), %v667_v4 }
 0x273   : > { %682 = vst [vmem:[#allocation3] sm:$0xff] (!%p1401_p7), %v666_v6 }
 0x275   : > { %v1561_v7 = vpop.f32.mrb[4].mxu0 }
 0x276   : > { %v619_v8 = vpop.f32.mrb[5].mxu0 }
 0x277   : > { %v1562_v9 = vpop.f32.mrb[6].mxu0 }
 0x278   : > { %v669_v10 = vpack.c.bf16 %v1562_v9, %v1561_v7  ;;  %v622_v11 = vpop.f32.mrb[7].mxu0 }
 0x279   : > { %v668_v12 = vpack.c.bf16 %v622_v11, %v619_v8 }
 0x27a   : > { %685 = vst [vmem:[#allocation3 + $0x18] sm:$0xff] (!%p1401_p7), %v669_v10 }
 0x27b   : > { %684 = vst [vmem:[#allocation3 + $0x10] sm:$0xff] (!%p1401_p7), %v668_v12 }
 0x27d   : > { %v1565_v13 = vpop.f32.mrb[8].mxu0 }
 0x27e   : > { %v635_v14 = vpop.f32.mrb[9].mxu0 }
 0x27f   : > { %v1566_v15 = vpop.f32.mrb[10].mxu0 }
 0x280   : > { %v671_v16 = vpack.c.bf16 %v1566_v15, %v1565_v13  ;;  %v638_v17 = vpop.f32.mrb[11].mxu0 }
 0x281   : > { %v670_v18 = vpack.c.bf16 %v638_v17, %v635_v14 }
 0x282   : > { %687 = vst [vmem:[#allocation3 + $0x28] sm:$0xff] (!%p1401_p7), %v671_v16 }
 0x283   : > { %677 = sbr.rel (%p1401_p7) target bundleno = 652 (0x28c), region = 64  ;;  %686 = vst [vmem:[#allocation3 + $0x20] sm:$0xff] (!%p1401_p7), %v670_v18 }
 0x285   : > { %v1569_v19 = vpop.f32.mrb[12].mxu0 }
 0x286   : > { %v651_v20 = vpop.f32.mrb[13].mxu0 }
 0x287   : > { %v1570_v21 = vpop.f32.mrb[14].mxu0 }
 0x288   : > { %v673_v22 = vpack.c.bf16 %v1570_v21, %v1569_v19  ;;  %v654_v23 = vpop.f32.mrb[15].mxu0 }
 0x289   : > { %v672_v24 = vpack.c.bf16 %v654_v23, %v651_v20 }
 0x28a   : > { %689 = vst [vmem:[#allocation3 + $0x38] sm:$0xff] %v673_v22 }
 0x28b   : > { %688 = vst [vmem:[#allocation3 + $0x30] sm:$0xff] %v672_v24 }
 0x28c PF: > { %v1778_v25 = vld [vmem:[%s2136_s5] sm:$0xff]   ;;  %1587 = vmatprep.mubr.bf16.mxu1 %v666_v6  ;;  %v1779_v26 = vld [vmem:[%s2136_s5 + $0x8] sm:$0xff]   ;;  %v1780_v27 = vld [vmem:[%s2136_s5 + $0x10] sm:$0xff]  }
 0x28d   : > { %1571 = vmatprep.subr.bf16.mxu1 %v1778_v25  ;;  %v1781_v28 = vld [vmem:[%s2136_s5 + $0x18] sm:$0xff]   ;;  %v1782_v29 = vld [vmem:[%s2136_s5 + $0x20] sm:$0xff]   ;;  %v1783_v30 = vld [vmem:[%s2136_s5 + $0x28] sm:$0xff]  }
 0x28e   : > { %1572 = vmatpush3.bf16.msra.mxu1 %v1778_v25  ;;  %v1784_v31 = vld [vmem:[%s2136_s5 + $0x30] sm:$0xff]   ;;  %v1785_v32 = vld [vmem:[%s2136_s5 + $0x38] sm:$0xff]   ;;  %v691_v34 = vld [vmem:[#allocation11] sm:$0xff] }
 0x28f   : > { %1573 = vmatprep.subr.bf16.mxu1 %v1779_v26  ;;  %v693_v33 = vld [vmem:[#allocation11 + $0x10] sm:$0xff]  ;;  %v694_v36 = vld [vmem:[#allocation11 + $0x18] sm:$0xff]  ;;  %v692_v39 = vld [vmem:[#allocation11 + $0x8] sm:$0xff] }
 0x290   : > { %v697_v45 = vld [vmem:[#allocation11 + $0x30] sm:$0xff]  ;;  %v695_v46 = vld [vmem:[#allocation11 + $0x20] sm:$0xff]  ;;  %v698_v48 = vld [vmem:[#allocation11 + $0x38] sm:$0xff] }
 0x291   : > { %v696_v51 = vld [vmem:[#allocation11 + $0x28] sm:$0xff]  ;;  %v701_v57 = vld [vmem:[#allocation11 + $0x50] sm:$0xff]  ;;  %v699_v58 = vld [vmem:[#allocation11 + $0x40] sm:$0xff] }
 0x292   : > { %1574 = vmatpush3.bf16.msra.mxu1 %v1779_v26  ;;  %v702_v60 = vld [vmem:[#allocation11 + $0x58] sm:$0xff]  ;;  %v700_v63 = vld [vmem:[#allocation11 + $0x48] sm:$0xff]  ;;  %v705_v5 = vld [vmem:[#allocation11 + $0x70] sm:$0xff] }
 0x293   : > { %1575 = vmatprep.subr.bf16.mxu1 %v1780_v27  ;;  %v703_v6 = vld [vmem:[#allocation11 + $0x60] sm:$0xff]  ;;  %v706_v8 = vld [vmem:[#allocation11 + $0x78] sm:$0xff]  ;;  %v704_v11 = vld [vmem:[#allocation11 + $0x68] sm:$0xff] }
 0x296   : > { %1576 = vmatpush3.bf16.msra.mxu1 %v1780_v27 }
 0x297   : > { %1577 = vmatprep.subr.bf16.mxu1 %v1781_v28 }
 0x29a   : > { %1578 = vmatpush3.bf16.msra.mxu1 %v1781_v28 }
 0x29b   : > { %1579 = vmatprep.subr.bf16.mxu1 %v1782_v29 }
 0x29e   : > { %1580 = vmatpush3.bf16.msra.mxu1 %v1782_v29 }
 0x29f   : > { %1581 = vmatprep.subr.bf16.mxu1 %v1783_v30 }
 0x2a2   : > { %1582 = vmatpush3.bf16.msra.mxu1 %v1783_v30 }
 0x2a3   : > { %1583 = vmatprep.subr.bf16.mxu1 %v1784_v31 }
 0x2a6   : > { %1584 = vmatpush3.bf16.msra.mxu1 %v1784_v31 }
 0x2a7   : > { %1585 = vmatprep.subr.bf16.mxu1 %v1785_v32 }
 0x2aa   : > { %1586 = vmatpush3.bf16.msra.mxu1 %v1785_v32 }
 0x2ad   : > { %1588 = vmatmul.mubr.bf16.vlgmr.msra.gmra.mrb[0].mxu1 %v667_v4 }
 0x2ae   : > { %1591 = vmatprep.mubr.bf16.mxu1 %v668_v12 }
 0x2b5   : > { %1592 = vmatmul.mubr.bf16.gmra.mrb[4].mxu1 %v669_v10 }
 0x2b6   : > { %1595 = vmatprep.mubr.bf16.mxu1 %v670_v18 }
 0x2bd   : > { %1596 = vmatmul.mubr.bf16.gmra.mrb[8].mxu1 %v671_v16 }
 0x2be   : > { %1599 = vmatprep.mubr.bf16.mxu1 %v672_v24 }
 0x2c5   : > { %1600 = vmatmul.mubr.bf16.gmra.mrb[12].mxu1 %v673_v22 }
 0x380   : > { %v1589_v35 = vpop.f32.mrb[0].mxu1 }
 0x381   : > { %v870_v37 = vadd.f32 %v1589_v35, %v693_v33  ;;  %v805_v38 = vpop.f32.mrb[1].mxu1 }
 0x382   : > { %v868_v40 = vadd.f32 %v805_v38, %v691_v34  ;;  %v1590_v41 = vpop.f32.mrb[2].mxu1 }
 0x383   : > { %886 = vst [vmem:[#allocation11 + $0x10] sm:$0xff] %v870_v37  ;;  %v871_v42 = vadd.f32 %v1590_v41, %v694_v36  ;;  %v808_v43 = vpop.f32.mrb[3].mxu1 }
 0x384   : > { %884 = vst [vmem:[#allocation11] sm:$0xff] %v868_v40  ;;  %v869_v44 = vadd.f32 %v808_v43, %v692_v39 }
 0x385   : > { %887 = vst [vmem:[#allocation11 + $0x18] sm:$0xff] %v871_v42 }
 0x386   : > { %885 = vst [vmem:[#allocation11 + $0x8] sm:$0xff] %v869_v44 }
 0x388   : > { %v1593_v47 = vpop.f32.mrb[4].mxu1 }
 0x389   : > { %v874_v49 = vadd.f32 %v1593_v47, %v697_v45  ;;  %v821_v50 = vpop.f32.mrb[5].mxu1 }
 0x38a   : > { %v872_v52 = vadd.f32 %v821_v50, %v695_v46  ;;  %v1594_v53 = vpop.f32.mrb[6].mxu1 }
 0x38b   : > { %890 = vst [vmem:[#allocation11 + $0x30] sm:$0xff] %v874_v49  ;;  %v875_v54 = vadd.f32 %v1594_v53, %v698_v48  ;;  %v824_v55 = vpop.f32.mrb[7].mxu1 }
 0x38c   : > { %888 = vst [vmem:[#allocation11 + $0x20] sm:$0xff] %v872_v52  ;;  %v873_v56 = vadd.f32 %v824_v55, %v696_v51 }
 0x38d   : > { %891 = vst [vmem:[#allocation11 + $0x38] sm:$0xff] %v875_v54 }
 0x38e   : > { %889 = vst [vmem:[#allocation11 + $0x28] sm:$0xff] %v873_v56 }
 0x390   : > { %v1597_v59 = vpop.f32.mrb[8].mxu1 }
 0x391   : > { %v878_v61 = vadd.f32 %v1597_v59, %v701_v57  ;;  %v837_v62 = vpop.f32.mrb[9].mxu1 }
 0x392   : > { %v876_v0 = vadd.f32 %v837_v62, %v699_v58  ;;  %v1598_v1 = vpop.f32.mrb[10].mxu1 }
 0x393   : > { %894 = vst [vmem:[#allocation11 + $0x50] sm:$0xff] %v878_v61  ;;  %v879_v2 = vadd.f32 %v1598_v1, %v702_v60  ;;  %v840_v3 = vpop.f32.mrb[11].mxu1 }
 0x394   : > { %892 = vst [vmem:[#allocation11 + $0x40] sm:$0xff] %v876_v0  ;;  %v877_v4 = vadd.f32 %v840_v3, %v700_v63 }
 0x395   : > { %895 = vst [vmem:[#allocation11 + $0x58] sm:$0xff] %v879_v2 }
 0x396   : > { %893 = vst [vmem:[#allocation11 + $0x48] sm:$0xff] %v877_v4 }
 0x398   : > { %v1601_v7 = vpop.f32.mrb[12].mxu1 }
 0x399   : > { %v882_v9 = vadd.f32 %v1601_v7, %v705_v5  ;;  %v853_v10 = vpop.f32.mrb[13].mxu1 }
 0x39a   : > { %v880_v12 = vadd.f32 %v853_v10, %v703_v6  ;;  %v1602_v13 = vpop.f32.mrb[14].mxu1 }
 0x39b   : > { %898 = vst [vmem:[#allocation11 + $0x70] sm:$0xff] %v882_v9  ;;  %v883_v14 = vadd.f32 %v1602_v13, %v706_v8  ;;  %v856_v15 = vpop.f32.mrb[15].mxu1 }
 0x39c   : > { %896 = vst [vmem:[#allocation11 + $0x60] sm:$0xff] %v880_v12  ;;  %v881_v16 = vadd.f32 %v856_v15, %v704_v11 }
 0x39d   : > { %899 = vst [vmem:[#allocation11 + $0x78] sm:$0xff] %v883_v14 }
 0x39e   : > { %897 = vst [vmem:[#allocation11 + $0x68] sm:$0xff] %v881_v16 }
 0x39f PF: > { %p900_p10 = scmp.eq.s32.totalorder %s2282_s12, 0 }
 0x3a1   : > { %p901_p13 = pnand %p900_p10, %p532_p3 }
 0x3a2   : > { %v916_v17 = vld [vmem:[#allocation3] sm:$0xff] (!%p901_p13)  ;;  %v917_v18 = vld [vmem:[#allocation3 + $0x8] sm:$0xff] (!%p901_p13)  ;;  %v918_v20 = vld [vmem:[#allocation3 + $0x10] sm:$0xff] (!%p901_p13)  ;;  %p1410_p1 = scmp.ge.s32.totalorder (!%p901_p13), %s1958_s18, 8 }
 0x3a3   : > { %904 = sbr.rel (%p901_p13) target bundleno = 1480 (0x5c8), region = 68  ;;  %1603 = vmatprep.subr.bf16.mxu0 (!%p901_p13), %v916_v17  ;;  %v908_v19 = vld [vmem:[#allocation4] sm:$0xff] (!%p901_p13)  ;;  %v919_v21 = vld [vmem:[#allocation3 + $0x18] sm:$0xff] (!%p901_p13)  ;;  %v921_v23 = vld [vmem:[#allocation3 + $0x28] sm:$0xff] (!%p901_p13) }
 0x3a4   : > { %1604 = vmatpush3.bf16.msra.mxu0 (!%p901_p13), %v916_v17  ;;  %1619 = vmatprep.mubr.bf16.mxu0 (!%p901_p13), %v908_v19  ;;  %v920_v22 = vld [vmem:[#allocation3 + $0x20] sm:$0xff] (!%p901_p13)  ;;  %v922_v24 = vld [vmem:[#allocation3 + $0x30] sm:$0xff] (!%p901_p13)  ;;  %v923_v25 = vld [vmem:[#allocation3 + $0x38] sm:$0xff] (!%p901_p13) }
 0x3a5   : > { %1605 = vmatprep.subr.bf16.mxu0 (!%p901_p13), %v917_v18  ;;  %v909_v26 = vld [vmem:[#allocation4 + $0x8] sm:$0xff] (!%p901_p13)  ;;  %v910_v27 = vld [vmem:[#allocation4 + $0x10] sm:$0xff] (!%p901_p13)  ;;  %v911_v28 = vld [vmem:[#allocation4 + $0x18] sm:$0xff] (!%p901_p13) }
 0x3a6   : > { %v912_v29 = vld [vmem:[#allocation4 + $0x20] sm:$0xff] (!%p901_p13)  ;;  %v913_v30 = vld [vmem:[#allocation4 + $0x28] sm:$0xff] (!%p901_p13)  ;;  %v914_v31 = vld [vmem:[#allocation4 + $0x30] sm:$0xff] (!%p901_p13) }
 0x3a7   : > { %v915_v32 = vld [vmem:[#allocation4 + $0x38] sm:$0xff] (!%p901_p13) }
 0x3a8   : > { %1606 = vmatpush3.bf16.msra.mxu0 (!%p901_p13), %v917_v18 }
 0x3a9   : > { %1607 = vmatprep.subr.bf16.mxu0 (!%p901_p13), %v918_v20 }
 0x3ac   : > { %1608 = vmatpush3.bf16.msra.mxu0 %v918_v20 }
 0x3ad   : > { %1609 = vmatprep.subr.bf16.mxu0 %v919_v21 }
 0x3b0   : > { %1610 = vmatpush3.bf16.msra.mxu0 %v919_v21 }
 0x3b1   : > { %1611 = vmatprep.subr.bf16.mxu0 %v920_v22 }
 0x3b4   : > { %1612 = vmatpush3.bf16.msra.mxu0 %v920_v22 }
 0x3b5   : > { %1613 = vmatprep.subr.bf16.mxu0 %v921_v23 }
 0x3b8   : > { %1614 = vmatpush3.bf16.msra.mxu0 %v921_v23 }
 0x3b9   : > { %1615 = vmatprep.subr.bf16.mxu0 %v922_v24 }
 0x3bc   : > { %1616 = vmatpush3.bf16.msra.mxu0 %v922_v24 }
 0x3bd   : > { %1617 = vmatprep.subr.bf16.mxu0 %v923_v25 }
 0x3c0   : > { %1618 = vmatpush3.bf16.msra.mxu0 %v923_v25 }
 0x3c3   : > { %1620 = vmatmul.mubr.bf16.vlgmr.msra.gmra.mrb[0].mxu0 %v909_v26 }
 0x3c4   : > { %1623 = vmatprep.mubr.bf16.mxu0 %v910_v27 }
 0x3cb   : > { %1624 = vmatmul.mubr.bf16.gmra.mrb[4].mxu0 %v911_v28 }
 0x3cc   : > { %1627 = vmatprep.mubr.bf16.mxu0 %v912_v29 }
 0x3d3   : > { %1628 = vmatmul.mubr.bf16.gmra.mrb[8].mxu0 %v913_v30 }
 0x3d4   : > { %1631 = vmatprep.mubr.bf16.mxu0 %v914_v31 }
 0x3db   : > { %1632 = vmatmul.mubr.bf16.gmra.mrb[12].mxu0 %v915_v32 }
 0x496   : > { %v1621_v33 = vpop.f32.mrb[0].mxu0 }
 0x497   : > { %v958_v34 = vpop.f32.mrb[1].mxu0 }
 0x498   : > { %v1622_v35 = vpop.f32.mrb[2].mxu0 }
 0x499   : > { %v1022_v36 = vpack.c.bf16 %v1622_v35, %v1621_v33  ;;  %v961_v37 = vpop.f32.mrb[3].mxu0 }
 0x49a   : > { %v1021_v38 = vpack.c.bf16 %v961_v37, %v958_v34 }
 0x49b   : > { %1038 = vst [vmem:[#allocation2 + $0x8] sm:$0xff] (!%p1410_p1), %v1022_v36 }
 0x49c   : > { %1037 = vst [vmem:[#allocation2] sm:$0xff] (!%p1410_p1), %v1021_v38 }
 0x49e   : > { %v1625_v39 = vpop.f32.mrb[4].mxu0 }
 0x49f   : > { %v974_v40 = vpop.f32.mrb[5].mxu0 }
 0x4a0   : > { %v1626_v41 = vpop.f32.mrb[6].mxu0 }
 0x4a1   : > { %v1024_v42 = vpack.c.bf16 %v1626_v41, %v1625_v39  ;;  %v977_v43 = vpop.f32.mrb[7].mxu0 }
 0x4a2   : > { %v1023_v44 = vpack.c.bf16 %v977_v43, %v974_v40 }
 0x4a3   : > { %1040 = vst [vmem:[#allocation2 + $0x18] sm:$0xff] (!%p1410_p1), %v1024_v42 }
 0x4a4   : > { %1039 = vst [vmem:[#allocation2 + $0x10] sm:$0xff] (!%p1410_p1), %v1023_v44 }
 0x4a6   : > { %v1629_v45 = vpop.f32.mrb[8].mxu0 }
 0x4a7   : > { %v990_v46 = vpop.f32.mrb[9].mxu0 }
 0x4a8   : > { %v1630_v47 = vpop.f32.mrb[10].mxu0 }
 0x4a9   : > { %v1026_v48 = vpack.c.bf16 %v1630_v47, %v1629_v45  ;;  %v993_v49 = vpop.f32.mrb[11].mxu0 }
 0x4aa   : > { %v1025_v50 = vpack.c.bf16 %v993_v49, %v990_v46 }
 0x4ab   : > { %1042 = vst [vmem:[#allocation2 + $0x28] sm:$0xff] (!%p1410_p1), %v1026_v48 }
 0x4ac   : > { %1032 = sbr.rel (%p1410_p1) target bundleno = 1205 (0x4b5), region = 72  ;;  %1041 = vst [vmem:[#allocation2 + $0x20] sm:$0xff] (!%p1410_p1), %v1025_v50 }
 0x4ae   : > { %v1633_v51 = vpop.f32.mrb[12].mxu0 }
 0x4af   : > { %v1006_v52 = vpop.f32.mrb[13].mxu0 }
 0x4b0   : > { %v1634_v53 = vpop.f32.mrb[14].mxu0 }
 0x4b1   : > { %v1028_v54 = vpack.c.bf16 %v1634_v53, %v1633_v51  ;;  %v1009_v55 = vpop.f32.mrb[15].mxu0 }
 0x4b2   : > { %v1027_v56 = vpack.c.bf16 %v1009_v55, %v1006_v52 }
 0x4b3   : > { %1044 = vst [vmem:[#allocation2 + $0x38] sm:$0xff] %v1028_v54 }
 0x4b4   : > { %1043 = vst [vmem:[#allocation2 + $0x30] sm:$0xff] %v1027_v56 }
 0x4b5 PF: > { %v1786_v57 = vld [vmem:[%s2136_s5] sm:$0xff]   ;;  %1651 = vmatprep.mubr.bf16.mxu1 %v1021_v38  ;;  %v1787_v58 = vld [vmem:[%s2136_s5 + $0x8] sm:$0xff]   ;;  %v1788_v59 = vld [vmem:[%s2136_s5 + $0x10] sm:$0xff]  }
 0x4b6   : > { %1635 = vmatprep.subr.bf16.mxu1 %v1786_v57  ;;  %v1789_v60 = vld [vmem:[%s2136_s5 + $0x18] sm:$0xff]   ;;  %v1790_v61 = vld [vmem:[%s2136_s5 + $0x20] sm:$0xff]   ;;  %v1791_v62 = vld [vmem:[%s2136_s5 + $0x28] sm:$0xff]  }
 0x4b7   : > { %1636 = vmatpush3.bf16.msra.mxu1 %v1786_v57  ;;  %v1792_v63 = vld [vmem:[%s2136_s5 + $0x30] sm:$0xff]   ;;  %v1793_v0 = vld [vmem:[%s2136_s5 + $0x38] sm:$0xff]   ;;  %v1046_v2 = vld [vmem:[#allocation11] sm:$0xff] }
 0x4b8   : > { %1637 = vmatprep.subr.bf16.mxu1 %v1787_v58  ;;  %v1048_v1 = vld [vmem:[#allocation11 + $0x10] sm:$0xff]  ;;  %v1049_v4 = vld [vmem:[#allocation11 + $0x18] sm:$0xff]  ;;  %v1047_v7 = vld [vmem:[#allocation11 + $0x8] sm:$0xff] }
 0x4b9   : > { %v1052_v13 = vld [vmem:[#allocation11 + $0x30] sm:$0xff]  ;;  %v1050_v14 = vld [vmem:[#allocation11 + $0x20] sm:$0xff]  ;;  %v1053_v16 = vld [vmem:[#allocation11 + $0x38] sm:$0xff] }
 0x4ba   : > { %v1051_v19 = vld [vmem:[#allocation11 + $0x28] sm:$0xff]  ;;  %v1056_v25 = vld [vmem:[#allocation11 + $0x50] sm:$0xff]  ;;  %v1054_v26 = vld [vmem:[#allocation11 + $0x40] sm:$0xff] }
 0x4bb   : > { %1638 = vmatpush3.bf16.msra.mxu1 %v1787_v58  ;;  %v1057_v28 = vld [vmem:[#allocation11 + $0x58] sm:$0xff]  ;;  %v1055_v31 = vld [vmem:[#allocation11 + $0x48] sm:$0xff]  ;;  %v1060_v37 = vld [vmem:[#allocation11 + $0x70] sm:$0xff] }
 0x4bc   : > { %1639 = vmatprep.subr.bf16.mxu1 %v1788_v59  ;;  %v1058_v38 = vld [vmem:[#allocation11 + $0x60] sm:$0xff]  ;;  %v1061_v40 = vld [vmem:[#allocation11 + $0x78] sm:$0xff]  ;;  %v1059_v43 = vld [vmem:[#allocation11 + $0x68] sm:$0xff] }
 0x4bf   : > { %1640 = vmatpush3.bf16.msra.mxu1 %v1788_v59 }
 0x4c0   : > { %1641 = vmatprep.subr.bf16.mxu1 %v1789_v60 }
 0x4c3   : > { %1642 = vmatpush3.bf16.msra.mxu1 %v1789_v60 }
 0x4c4   : > { %1643 = vmatprep.subr.bf16.mxu1 %v1790_v61 }
 0x4c7   : > { %1644 = vmatpush3.bf16.msra.mxu1 %v1790_v61 }
 0x4c8   : > { %1645 = vmatprep.subr.bf16.mxu1 %v1791_v62 }
 0x4cb   : > { %1646 = vmatpush3.bf16.msra.mxu1 %v1791_v62 }
 0x4cc   : > { %1647 = vmatprep.subr.bf16.mxu1 %v1792_v63 }
 0x4cf   : > { %1648 = vmatpush3.bf16.msra.mxu1 %v1792_v63 }
 0x4d0   : > { %1649 = vmatprep.subr.bf16.mxu1 %v1793_v0 }
 0x4d3   : > { %1650 = vmatpush3.bf16.msra.mxu1 %v1793_v0 }
 0x4d6   : > { %1652 = vmatmul.mubr.bf16.vlgmr.msra.gmra.mrb[0].mxu1 %v1022_v36 }
 0x4d7   : > { %1655 = vmatprep.mubr.bf16.mxu1 %v1023_v44 }
 0x4de   : > { %1656 = vmatmul.mubr.bf16.gmra.mrb[4].mxu1 %v1024_v42 }
 0x4df   : > { %1659 = vmatprep.mubr.bf16.mxu1 %v1025_v50 }
 0x4e6   : > { %1660 = vmatmul.mubr.bf16.gmra.mrb[8].mxu1 %v1026_v48 }
 0x4e7   : > { %1663 = vmatprep.mubr.bf16.mxu1 %v1027_v56 }
 0x4ee   : > { %1664 = vmatmul.mubr.bf16.gmra.mrb[12].mxu1 %v1028_v54 }
 0x5a9   : > { %v1653_v3 = vpop.f32.mrb[0].mxu1 }
 0x5aa   : > { %v1225_v5 = vadd.f32 %v1653_v3, %v1048_v1  ;;  %v1160_v6 = vpop.f32.mrb[1].mxu1 }
 0x5ab   : > { %v1223_v8 = vadd.f32 %v1160_v6, %v1046_v2  ;;  %v1654_v9 = vpop.f32.mrb[2].mxu1 }
 0x5ac   : > { %1241 = vst [vmem:[#allocation11 + $0x10] sm:$0xff] %v1225_v5  ;;  %v1226_v10 = vadd.f32 %v1654_v9, %v1049_v4  ;;  %v1163_v11 = vpop.f32.mrb[3].mxu1 }
 0x5ad   : > { %1239 = vst [vmem:[#allocation11] sm:$0xff] %v1223_v8  ;;  %v1224_v12 = vadd.f32 %v1163_v11, %v1047_v7 }
 0x5ae   : > { %1242 = vst [vmem:[#allocation11 + $0x18] sm:$0xff] %v1226_v10 }
 0x5af   : > { %1240 = vst [vmem:[#allocation11 + $0x8] sm:$0xff] %v1224_v12 }
 0x5b1   : > { %v1657_v15 = vpop.f32.mrb[4].mxu1 }
 0x5b2   : > { %v1229_v17 = vadd.f32 %v1657_v15, %v1052_v13  ;;  %v1176_v18 = vpop.f32.mrb[5].mxu1 }
 0x5b3   : > { %v1227_v20 = vadd.f32 %v1176_v18, %v1050_v14  ;;  %v1658_v21 = vpop.f32.mrb[6].mxu1 }
 0x5b4   : > { %1245 = vst [vmem:[#allocation11 + $0x30] sm:$0xff] %v1229_v17  ;;  %v1230_v22 = vadd.f32 %v1658_v21, %v1053_v16  ;;  %v1179_v23 = vpop.f32.mrb[7].mxu1 }
 0x5b5   : > { %1243 = vst [vmem:[#allocation11 + $0x20] sm:$0xff] %v1227_v20  ;;  %v1228_v24 = vadd.f32 %v1179_v23, %v1051_v19 }
 0x5b6   : > { %1246 = vst [vmem:[#allocation11 + $0x38] sm:$0xff] %v1230_v22 }
 0x5b7   : > { %1244 = vst [vmem:[#allocation11 + $0x28] sm:$0xff] %v1228_v24 }
 0x5b9   : > { %v1661_v27 = vpop.f32.mrb[8].mxu1 }
 0x5ba   : > { %v1233_v29 = vadd.f32 %v1661_v27, %v1056_v25  ;;  %v1192_v30 = vpop.f32.mrb[9].mxu1 }
 0x5bb   : > { %v1231_v32 = vadd.f32 %v1192_v30, %v1054_v26  ;;  %v1662_v33 = vpop.f32.mrb[10].mxu1 }
 0x5bc   : > { %1249 = vst [vmem:[#allocation11 + $0x50] sm:$0xff] %v1233_v29  ;;  %v1234_v34 = vadd.f32 %v1662_v33, %v1057_v28  ;;  %v1195_v35 = vpop.f32.mrb[11].mxu1 }
 0x5bd   : > { %1247 = vst [vmem:[#allocation11 + $0x40] sm:$0xff] %v1231_v32  ;;  %v1232_v36 = vadd.f32 %v1195_v35, %v1055_v31 }
 0x5be   : > { %1250 = vst [vmem:[#allocation11 + $0x58] sm:$0xff] %v1234_v34 }
 0x5bf   : > { %1248 = vst [vmem:[#allocation11 + $0x48] sm:$0xff] %v1232_v36 }
 0x5c1   : > { %v1665_v39 = vpop.f32.mrb[12].mxu1 }
 0x5c2   : > { %v1237_v41 = vadd.f32 %v1665_v39, %v1060_v37  ;;  %v1208_v42 = vpop.f32.mrb[13].mxu1 }
 0x5c3   : > { %v1235_v44 = vadd.f32 %v1208_v42, %v1058_v38  ;;  %v1666_v45 = vpop.f32.mrb[14].mxu1 }
 0x5c4   : > { %1253 = vst [vmem:[#allocation11 + $0x70] sm:$0xff] %v1237_v41  ;;  %v1238_v46 = vadd.f32 %v1666_v45, %v1061_v40  ;;  %v1211_v47 = vpop.f32.mrb[15].mxu1 }
 0x5c5   : > { %1251 = vst [vmem:[#allocation11 + $0x60] sm:$0xff] %v1235_v44  ;;  %v1236_v48 = vadd.f32 %v1211_v47, %v1059_v43 }
 0x5c6   : > { %1254 = vst [vmem:[#allocation11 + $0x78] sm:$0xff] %v1238_v46 }
 0x5c7   : > { %1252 = vst [vmem:[#allocation11 + $0x68] sm:$0xff] %v1236_v48 }
 0x5c8 PF: > { %p2210_p2 = scmp.eq.s32.totalorder %s1368_s21, 8  ;;  %s1973_s5 = smov [#allocation11]  }
 0x5c9   : > { %s1261_s22 = sshll.u32 %s1973_s5, 4  ;;  %s1262_s22 = int_to_ptr.vmem [resolvable:$true] %s1261_s22 }
 0x5ca   : > { %s1878_s25 = scalar_lea.vmem %s1262_s22, 2048  ;;  %p1885_p5 = scmp.lt.s32.totalorder %s1262_s22, %s1262_s22 }
 0x5cb   : > { %p1879_p4 = scmp.ne.s32.totalorder %s1262_s22, %s1878_s25  ;;  %p1886_p8 = scmp.lt.s32.totalorder %s1878_s25, %s1878_s25 }
 0x5cd   : > { %p1880_p12 = pnand %p1879_p4, %p2210_p2  ;;  %p1887_p11 = por %p1886_p8, %p1885_p5 }
 0x5cf   : > { %p1881_p0 = pneg %p1880_p12 }
 0x5d1   : > { %p1888_p3 = pnand %p1887_p11, %p1881_p0 }
 0x5d3   : > { %1891 = shalt.err (!%p1888_p3)
}
 0x5d4   : > { %s1892_s21 = scalar_lea.hbm %s2258_s4, 2048 }
 0x5d5   : > { %p1893_p6 = scmp.ne.s32.totalorder %s2258_s4, %s1892_s21  ;;  %p1898_p10 = scmp.lt.u32.totalorder %s1892_s21, %s2258_s4 }
 0x5d7   : > { %p1894_p9 = pnand %p1893_p6, %p2210_p2 }
 0x5d9   : > { %p1895_p7 = pneg %p1894_p9 }
 0x5db   : > { %p1900_p13 = pnand %p1898_p10, %p1895_p7 }
 0x5dd   : > { %1903 = shalt.err (!%p1900_p13)
}
 0x5de   : > { %s1974_s15 = smov 128   ;;  %s1975_s24 = smov 8  }
 0x5df   : > { %1692 = dma.vmem_to_hbm [thread:$0]  (%p2210_p2), %s1262_s22, 2048, %s2258_s4, [#allocation8], %s1974_s15, %s1974_s15, %s1975_s24  }
 0x5e0   : > { %1941 = dma.done.wait (%p2210_p2), [#allocation8], 2048  }
 0x5e1   : > { %1943 = vsyncadd (%p2210_p2), [#allocation8], 4294965248 }
 0x5e2 PF: > { %s21_s20 = sadd.s32 1, %s1966_s20   ;;  %s2272_s15 = smov %s1950_s16 }
 0x5e3   : > { %p18_p1 = scmp.ge.s32.totalorder %s21_s20, 11   ;;  %s2273_s16 = smov %s1954_s17 }
 0x5e4   : > { %s2274_s17 = smov %s2096_s10  ;;  %s2275_s18 = smov %s1962_s19 }
 0x5e5   : > { %s2276_s19 = smov %s2278_s28  ;;  %20 = sbr.rel (!%p18_p1) target bundleno = 7 (0x7), region = 122 }
 0x5ec   :  { %1277 = vsyncpa [#allocation7], 1 }
 0x5ed   :  { %1279 = vsyncpa [#allocation7 + $0x1], 1 }
 0x5ee   :  { %1280 = vsyncpa [#allocation10], 1 }
 0x5ef   :  { %1282 = vsyncpa [#allocation10 + $0x1], 1 }
 0x5f0   :  { %1283 = vsyncpa [#allocation8], 1 }
 0x5f1   :  { %1285 = vsyncpa [#allocation8 + $0x1], 1 }
 0x5f2   :  { %1286 = vsyncmov [#allocation5] }
 0x5f5   :  { %s1287_s14 = vpop.sfrf %1286 }
 0x5f6   :  { %p1423_p2 = scmp.ne.s32.totalorder %s1287_s14, 0 }
 0x5f8   :  { %1291 = shalt.err (%p1423_p2)  }

</bundles_post_ra>
